<compile_context>
chip_gen: v6e
topology: v6e:2x2x1
jax: 0.10.0
libtpu: 0.0.40
codegen_flags: <defaults>
</compile_context>

<pallas_src>
import functools
import math

import jax
import jax.numpy as jnp
from jax.experimental import pallas as pl
from jax.experimental.pallas import tpu as pltpu

_MIB = 1024 * 1024


def _vmem_capacity_bytes():
    """VMEM capacity per core (v5e/v6e: 128 MiB, v7x: 64 MiB). Safe fallback 64 MiB."""
    try:
        cap = int(pltpu.get_tpu_info().vmem_capacity_bytes)
        if cap > 0:
            return cap
    except Exception:
        pass
    return 64 * _MIB


def _sublane_multiple(itemsize):
    # Packed-sublane count: f32 -> 8, bf16/f16 -> 16, int8/fp8 -> 32.
    return 8 * max(1, 4 // max(1, itemsize))


def _round_up(a, m):
    return ((a + m - 1) // m) * m


def _vmem_limit(vmem_cap, tile_bytes):
    # Tile bytes already account for in+out double-buffering; add headroom.
    return int(min(vmem_cap - 4 * _MIB, max(tile_bytes + 16 * _MIB, 32 * _MIB)))


def _finish(e, s, out_dtype):
    # 1/s via EUP approx reciprocal + one Newton step (near-exact f32, frees VPU).
    inv = pl.reciprocal(s, approx=True)
    inv = inv * (2.0 - s * inv)
    return (e * inv).astype(out_dtype)


def _softmax_lane_kernel(x_ref, o_ref):
    # x_ref/o_ref: (tile_rows, D); reduce over lanes (last axis).
    x = x_ref[...].astype(jnp.float32)
    m = jnp.max(x, axis=-1, keepdims=True)
    e = jnp.exp(x - m)
    s = jnp.sum(e, axis=-1, keepdims=True)
    o_ref[...] = _finish(e, s, o_ref.dtype)


def _softmax_sublane_kernel(x_ref, o_ref):
    # x_ref/o_ref: (tile_p, D, tile_cols); reduce over sublane axis (-2).
    x = x_ref[...].astype(jnp.float32)
    m = jnp.max(x, axis=-2, keepdims=True)
    e = jnp.exp(x - m)
    s = jnp.sum(e, axis=-2, keepdims=True)
    o_ref[...] = _finish(e, s, o_ref.dtype)


def _softmax_last_axis_2d(x2d):
    rows, d = x2d.shape
    itemsize = jnp.dtype(x2d.dtype).itemsize
    pack = _sublane_multiple(itemsize)
    vmem_cap = _vmem_capacity_bytes()
    budget = vmem_cap // 2  # leave half the chip's VMEM as headroom

    # 2 arrays (in + out) x 2 pipeline buffers each.
    bytes_per_row = 4 * d * itemsize
    tile_rows = max(pack, (budget // max(bytes_per_row, 1)) // pack * pack)
    tile_rows = min(tile_rows, 2048)                 # diminishing returns beyond this
    tile_rows = min(tile_rows, _round_up(rows, pack))
    tile_bytes = 4 * tile_rows * d * itemsize

    grid = (pl.cdiv(rows, tile_rows),)
    return pl.pallas_call(
        _softmax_lane_kernel,
        out_shape=jax.ShapeDtypeStruct((rows, d), x2d.dtype),
        grid=grid,
        in_specs=[pl.BlockSpec((tile_rows, d), lambda i: (i, 0))],
        out_specs=pl.BlockSpec((tile_rows, d), lambda i: (i, 0)),
        compiler_params=pltpu.CompilerParams(
            dimension_semantics=("parallel",),
            vmem_limit_bytes=_vmem_limit(vmem_cap, tile_bytes),
        ),
    )(x2d)


def _softmax_middle_axis_3d(x3d):
    p, d, c = x3d.shape
    itemsize = jnp.dtype(x3d.dtype).itemsize
    vmem_cap = _vmem_capacity_bytes()
    budget = vmem_cap // 2

    plane_bytes = 4 * d * itemsize          # per lane-column, in+out double-buffered
    full_cols_bytes = plane_bytes * c
    if full_cols_bytes <= budget:
        tile_cols = c
        tile_p = max(1, min(p, budget // max(full_cols_bytes, 1)))
    else:
        tile_cols = max(128, (budget // max(plane_bytes, 1)) // 128 * 128)
        tile_cols = min(tile_cols, _round_up(c, 128))
        tile_p = 1
    tile_bytes = 4 * tile_p * d * tile_cols * itemsize

    grid = (pl.cdiv(p, tile_p), pl.cdiv(c, tile_cols))
    return pl.pallas_call(
        _softmax_sublane_kernel,
        out_shape=jax.ShapeDtypeStruct((p, d, c), x3d.dtype),
        grid=grid,
        in_specs=[pl.BlockSpec((tile_p, d, tile_cols), lambda i, j: (i, 0, j))],
        out_specs=pl.BlockSpec((tile_p, d, tile_cols), lambda i, j: (i, 0, j)),
        compiler_params=pltpu.CompilerParams(
            dimension_semantics=("parallel", "parallel"),
            vmem_limit_bytes=_vmem_limit(vmem_cap, tile_bytes),
        ),
    )(x3d)


@functools.partial(jax.jit, static_argnames=("dim",))
def my_softmax(x, dim=-1):
    """Forward pass of MySoftmax: numerically-stable softmax over axis `dim`."""
    ndim = x.ndim
    if ndim == 0:
        return jnp.ones_like(x)
    dim = dim % ndim
    shape = x.shape
    d = shape[dim]

    # Fast path: softmax axis is already the minor (lane) axis.
    if dim == ndim - 1:
        rows = math.prod(shape[:-1])
        out2d = _softmax_last_axis_2d(x.reshape(rows, d))
        return out2d.reshape(shape)

    # dim != last: keep the native layout, reduce over the sublane axis.
    prefix = math.prod(shape[:dim])
    suffix = math.prod(shape[dim + 1:])
    itemsize = jnp.dtype(x.dtype).itemsize
    vmem_cap = _vmem_capacity_bytes()
    min_sublane_tile = 4 * d * min(suffix, 128) * itemsize
    if min_sublane_tile <= vmem_cap // 2:
        out3d = _softmax_middle_axis_3d(x.reshape(prefix, d, suffix))
        return out3d.reshape(shape)

    # TODO(synk): for huge reduction dims that don't fit VMEM even at a minimal
    # tile, an online (running max/sum) formulation over an extra grid axis
    # would avoid this transpose round-trip; fall back to moving `dim` last.
    perm = tuple(i for i in range(ndim) if i != dim) + (dim,)
    xt = jnp.transpose(x, perm)
    out2d = _softmax_last_axis_2d(xt.reshape(math.prod(xt.shape[:-1]), d))
    out_t = out2d.reshape(xt.shape)
    inv_perm = [0] * ndim
    for i, p in enumerate(perm):
        inv_perm[p] = i
    return jnp.transpose(out_t, tuple(inv_perm))


class MySoftmax:
    """JAX/Pallas equivalent of the PyTorch MySoftmax module (forward only)."""

    def __init__(self, dim=None):
        self.dim = dim if dim is not None else -1

    def __call__(self, x):
        return my_softmax(x, dim=self.dim)


if __name__ == "__main__":
    key = jax.random.PRNGKey(0)
    x = jax.random.normal(key, (2, 4, 16, 16), dtype=jnp.float32)

    # Default dim=-1 (lane-reduce path).
    out = jax.block_until_ready(MySoftmax(dim=-1)(x))
    ref = jax.nn.softmax(x, axis=-1)
    assert out.shape == x.shape and out.dtype == x.dtype
    assert jnp.allclose(out, ref, atol=1e-5, rtol=1e-5)
    assert jnp.allclose(jnp.sum(out, axis=-1), 1.0, atol=1e-4)

    # Non-last dims (sublane-reduce path, no transposes).
    out1 = jax.block_until_ready(MySoftmax(dim=1)(x))
    assert jnp.allclose(out1, jax.nn.softmax(x, axis=1), atol=1e-5, rtol=1e-5)

    out2 = jax.block_until_ready(MySoftmax(dim=2)(x))
    assert jnp.allclose(out2, jax.nn.softmax(x, axis=2), atol=1e-5, rtol=1e-5)

    # bf16 input (16-row packed-sublane tile multiple).
    xb = x.astype(jnp.bfloat16)
    outb = jax.block_until_ready(MySoftmax(dim=-1)(xb))
    refb = jax.nn.softmax(xb.astype(jnp.float32), axis=-1)
    assert outb.dtype == jnp.bfloat16
    assert jnp.allclose(outb.astype(jnp.float32), refb, atol=2e-2, rtol=2e-2)

    print("KERNEL_OK")
</pallas_src>

<mosaic_0001>
module attributes {stable_mosaic.version = 11 : i64} {
  func.func @_softmax_lane_kernel(%arg0: i32, %arg1: memref<128x16xf32, #tpu.memory_space<vmem>>, %arg2: memref<128x16xf32, #tpu.memory_space<vmem>>) attributes {dimension_semantics = [#tpu.dimension_semantics<parallel>], iteration_bounds = array<i64: 1>, scalar_prefetch = 0 : i64, scratch_operands = 0 : i64, tpu.core_type = #tpu.core_type<tc>, window_params = [{transform_indices = @transform_0, window_bounds = array<i64: 128, 16>}, {transform_indices = @transform_1, window_bounds = array<i64: 128, 16>}]} {
    %c0 = arith.constant 0 : index
    %c0_0 = arith.constant 0 : index
    %0 = vector.load %arg1[%c0, %c0_0] : memref<128x16xf32, #tpu.memory_space<vmem>>, vector<128x16xf32>
    %cst = arith.constant dense<0xFF800000> : vector<128xf32>
    %1 = vector.multi_reduction <maximumf>, %0, %cst [1] : vector<128x16xf32> to vector<128xf32>
    %2 = vector.shape_cast %1 : vector<128xf32> to vector<128x1xf32>
    %3 = vector.broadcast %2 : vector<128x1xf32> to vector<128x16xf32>
    %4 = arith.subf %0, %3 : vector<128x16xf32>
    %5 = math.exp %4 : vector<128x16xf32>
    %cst_1 = arith.constant dense<0.000000e+00> : vector<128xf32>
    %6 = vector.multi_reduction <add>, %5, %cst_1 [1] : vector<128x16xf32> to vector<128xf32>
    %7 = vector.shape_cast %6 : vector<128xf32> to vector<128x1xf32>
    %8 = tpu.reciprocal %7 {approx = true} : vector<128x1xf32> -> vector<128x1xf32>
    %9 = arith.mulf %7, %8 : vector<128x1xf32>
    %cst_2 = arith.constant 2.000000e+00 : f32
    %10 = vector.broadcast %cst_2 : f32 to vector<128x1xf32>
    %11 = arith.subf %10, %9 : vector<128x1xf32>
    %12 = arith.mulf %8, %11 : vector<128x1xf32>
    %13 = vector.broadcast %12 : vector<128x1xf32> to vector<128x16xf32>
    %14 = arith.mulf %5, %13 : vector<128x16xf32>
    %c0_3 = arith.constant 0 : index
    %c0_4 = arith.constant 0 : index
    %15 = vector.load %arg2[%c0_3, %c0_4] : memref<128x16xf32, #tpu.memory_space<vmem>>, vector<128x16xf32>
    tpu.vector_store %arg2[%c0_3, %c0_4], %14 {strides = array<i32>} : memref<128x16xf32, #tpu.memory_space<vmem>>, vector<128x16xf32>,
    return
  }
  func.func @transform_0(%arg0: i32) -> (i32, i32) {
    %c0_i32 = arith.constant 0 : i32
    %c0_i32_0 = arith.constant 0 : i32
    return %arg0, %c0_i32 : i32, i32
  }
  func.func @transform_1(%arg0: i32) -> (i32, i32) {
    %c0_i32 = arith.constant 0 : i32
    %c0_i32_0 = arith.constant 0 : i32
    return %arg0, %c0_i32 : i32, i32
  }
}

</mosaic_0001>

<bundles_post_ra>
// kernel: my_softmax.1
= control target key start
LH: loop header
LB: loop body
LE: loop exit
PB: predicated region body
PF: predicated region fallthrough
CT: control target
= control target key end

     0   :  { %6 = vsyncpa [#allocation3], 0  ;;  %s579_s0 = inlined_call_operand.hbm [shape: f32[128,16], index: 0, kind: input, shape index: {}]   ;;  %s580_s1 = inlined_call_operand.hbm [shape: f32[128,16], index: 1, kind: output, shape index: {}]  }
   0x1   :  { %7 = vsyncpa [#allocation4], 0  ;;  %s409_s6 = smov [#allocation2]  }
   0x2   :  { %s13_s7 = sshll.u32 %s409_s6, 4  ;;  %s14_s7 = int_to_ptr.vmem [resolvable:$true] %s13_s7 }
   0x3   :  { %s373_s8 = scalar_lea.vmem %s14_s7, 2048  ;;  %p378_p1 = scmp.lt.s32.totalorder %s14_s7, %s14_s7 }
   0x4   :  { %p374_p0 = scmp.ne.s32.totalorder %s14_s7, %s373_s8  ;;  %p379_p2 = scmp.lt.s32.totalorder %s373_s8, %s373_s8 }
   0x6   :  { %p380_p3 = por %p379_p2, %p378_p1 }
   0x8   :  { %p381_p4 = pnand %p380_p3, %p374_p0 }
   0xa   :  { %384 = shalt.err (!%p381_p4)
}
   0xb   :  { %s410_s9 = smov 128   ;;  %s411_s10 = smov 8  }
   0xc   :  { %19 = dma.hbm_to_vmem [thread:$0]  %s579_s0, 2048, %s14_s7, [#allocation3], %s410_s9, %s410_s9, %s411_s10  }
   0xd   :  { %405 = dma.done.wait [#allocation3], 2048  }
   0xe   :  { %406 = vsyncadd [#allocation3], 4294965248  ;;  %vm39_vm0 = vcmask 130048   ;;  %v23_v0 = vld [vmem:[#allocation2] sm:$0xff]  ;;  %v25_v1 = vld [vmem:[#allocation2 + $0x10] sm:$0xff]  ;;  %s412_s0 = smov [#allocation5]  }
   0xf   :  { %v24_v2 = vld [vmem:[#allocation2 + $0x8] sm:$0xff]  ;;  %v40_v3 = vsel %vm39_vm0, %v23_v0, -inf  ;;  %v46_v4 = vsel %vm39_vm0, %v25_v1, -inf  ;;  %v26_v5 = vld [vmem:[#allocation2 + $0x18] sm:$0xff]  ;;  %v27_v8 = vld [vmem:[#allocation2 + $0x20] sm:$0xff]  ;;  %s285_s13 = sshll.u32 %s412_s0, 4  ;;  %s286_s13 = int_to_ptr.vmem [resolvable:$true] %s285_s13 }
  0x10   :  { %41 = vmax.xlane.f32.xlu0 %v40_v3  ;;  %47 = vmax.xlane.f32.xlu1 %v46_v4  ;;  %v43_v6 = vsel %vm39_vm0, %v24_v2, -inf  ;;  %v49_v7 = vsel %vm39_vm0, %v26_v5, -inf  ;;  %v28_v9 = vld [vmem:[#allocation2 + $0x28] sm:$0xff]  ;;  %v52_v10 = vsel %vm39_vm0, %v27_v8, -inf  ;;  %v29_v12 = vld [vmem:[#allocation2 + $0x30] sm:$0xff]  ;;  %v30_v13 = vld [vmem:[#allocation2 + $0x38] sm:$0xff]  ;;  %p390_p6 = scmp.lt.s32.totalorder %s286_s13, %s286_s13 }
  0x11   :  { %v55_v11 = vsel %vm39_vm0, %v28_v9, -inf  ;;  %v58_v14 = vsel %vm39_vm0, %v29_v12, -inf  ;;  %v61_v15 = vsel %vm39_vm0, %v30_v13, -inf  ;;  %v437_v16 = vld [vmem:[#allocation2 + $0x40] sm:$0xff]  ;;  %v439_v17 = vld [vmem:[#allocation2 + $0x48] sm:$0xff]  ;;  %v445_v20 = vld [vmem:[#allocation2 + $0x50] sm:$0xff] }
  0x12   :  { %v64_v18 = vsel %vm39_vm0, %v437_v16, -inf  ;;  %v67_v19 = vsel %vm39_vm0, %v439_v17, -inf  ;;  %v447_v21 = vld [vmem:[#allocation2 + $0x58] sm:$0xff]  ;;  %v70_v22 = vsel %vm39_vm0, %v445_v20, -inf  ;;  %v453_v24 = vld [vmem:[#allocation2 + $0x60] sm:$0xff]  ;;  %v455_v25 = vld [vmem:[#allocation2 + $0x68] sm:$0xff] }
  0x13   :  { %v73_v23 = vsel %vm39_vm0, %v447_v21, -inf  ;;  %v76_v26 = vsel %vm39_vm0, %v453_v24, -inf  ;;  %v79_v27 = vsel %vm39_vm0, %v455_v25, -inf  ;;  %v461_v28 = vld [vmem:[#allocation2 + $0x70] sm:$0xff]  ;;  %v463_v29 = vld [vmem:[#allocation2 + $0x78] sm:$0xff]  ;;  %s385_s14 = scalar_lea.vmem %s286_s13, 2048 }
  0x14   :  { %44 = vmax.xlane.f32.xlu0 %v43_v6  ;;  %50 = vmax.xlane.f32.xlu1 %v49_v7  ;;  %v82_v30 = vsel %vm39_vm0, %v461_v28, -inf  ;;  %v85_v31 = vsel %vm39_vm0, %v463_v29, -inf  ;;  %p386_p5 = scmp.ne.s32.totalorder %s286_s13, %s385_s14  ;;  %p391_p7 = scmp.lt.s32.totalorder %s385_s14, %s385_s14 }
  0x16   :  { %p392_p8 = por %p391_p7, %p390_p6 }
  0x18   :  { %53 = vmax.xlane.f32.xlu0 %v52_v10  ;;  %56 = vmax.xlane.f32.xlu1 %v55_v11  ;;  %p393_p9 = pnand %p392_p8, %p386_p5 }
  0x1c   :  { %59 = vmax.xlane.f32.xlu0 %v58_v14  ;;  %62 = vmax.xlane.f32.xlu1 %v61_v15 }
  0x20   :  { %65 = vmax.xlane.f32.xlu0 %v64_v18  ;;  %68 = vmax.xlane.f32.xlu1 %v67_v19 }
  0x24   :  { %71 = vmax.xlane.f32.xlu0 %v70_v22  ;;  %74 = vmax.xlane.f32.xlu1 %v73_v23 }
  0x28   :  { %77 = vmax.xlane.f32.xlu0 %v76_v26  ;;  %80 = vmax.xlane.f32.xlu1 %v79_v27 }
  0x2c   :  { %83 = vmax.xlane.f32.xlu0 %v82_v30  ;;  %86 = vmax.xlane.f32.xlu1 %v85_v31 }
  0x99   :  { %v42_v32 = vpop.xlane.xlu0 %41  ;;  %v48_v33 = vpop.xlane.xlu1 %47 }
  0x9a   :  { %v88_v34 = vsub.f32 %v23_v0, %v42_v32  ;;  %v90_v35 = vsub.f32 %v25_v1, %v48_v33 }
  0x9c   :  { %v104_v36 = vmul.f32 1.442695, %v88_v34  ;;  %v108_v37 = vmul.f32 1.442695, %v90_v35 }
  0x9d   :  { %v45_v38 = vpop.xlane.xlu0 %44  ;;  %v51_v39 = vpop.xlane.xlu1 %50 }
  0x9e   :  { %301 = vpow2.f32 %v104_v36  ;;  %v89_v40 = vsub.f32 %v24_v2, %v45_v38  ;;  %v91_v41 = vsub.f32 %v26_v5, %v51_v39 }
  0x9f   :  { %303 = vpow2.f32 %v108_v37 }
  0xa0   :  { %v106_v42 = vmul.f32 1.442695, %v89_v40  ;;  %v110_v43 = vmul.f32 1.442695, %v91_v41 }
  0xa1   :  { %v54_v44 = vpop.xlane.xlu0 %53  ;;  %v57_v45 = vpop.xlane.xlu1 %56 }
  0xa2   :  { %305 = vpow2.f32 %v106_v42  ;;  %v92_v46 = vsub.f32 %v27_v8, %v54_v44  ;;  %v93_v47 = vsub.f32 %v28_v9, %v57_v45 }
  0xa3   :  { %307 = vpow2.f32 %v110_v43 }
  0xa4   :  { %v112_v48 = vmul.f32 1.442695, %v92_v46  ;;  %v114_v49 = vmul.f32 1.442695, %v93_v47 }
  0xa5   :  { %v60_v50 = vpop.xlane.xlu0 %59  ;;  %v63_v51 = vpop.xlane.xlu1 %62 }
  0xa6   :  { %309 = vpow2.f32 %v112_v48  ;;  %v94_v52 = vsub.f32 %v29_v12, %v60_v50  ;;  %v95_v53 = vsub.f32 %v30_v13, %v63_v51 }
  0xa7   :  { %311 = vpow2.f32 %v114_v49 }
  0xa8   :  { %v116_v54 = vmul.f32 1.442695, %v94_v52  ;;  %v118_v55 = vmul.f32 1.442695, %v95_v53 }
  0xa9   :  { %v66_v56 = vpop.xlane.xlu0 %65  ;;  %v69_v57 = vpop.xlane.xlu1 %68 }
  0xaa   :  { %313 = vpow2.f32 %v116_v54  ;;  %v96_v58 = vsub.f32 %v437_v16, %v66_v56  ;;  %v97_v59 = vsub.f32 %v439_v17, %v69_v57 }
  0xab   :  { %v471_v60 = vpop.eup %301  ;;  %315 = vpow2.f32 %v118_v55 }
  0xac   :  { %v473_v61 = vpop.eup %303  ;;  %v120_v62 = vmul.f32 1.442695, %v96_v58  ;;  %v122_v63 = vmul.f32 1.442695, %v97_v59  ;;  %v136_v0 = vsel %vm39_vm0, %v471_v60, 0.0 }
  0xad   :  { %137 = vadd.xlane.f32.xlu0 %v136_v0  ;;  %v72_v1 = vpop.xlane.xlu0 %71  ;;  %v75_v2 = vpop.xlane.xlu1 %74  ;;  %v142_v5 = vsel %vm39_vm0, %v473_v61, 0.0 }
  0xae   :  { %317 = vpow2.f32 %v120_v62  ;;  %v98_v3 = vsub.f32 %v445_v20, %v72_v1  ;;  %v99_v4 = vsub.f32 %v447_v21, %v75_v2 }
  0xaf   :  { %v481_v6 = vpop.eup %305  ;;  %319 = vpow2.f32 %v122_v63 }
  0xb0   :  { %v483_v7 = vpop.eup %307  ;;  %v124_v8 = vmul.f32 1.442695, %v98_v3  ;;  %v126_v9 = vmul.f32 1.442695, %v99_v4  ;;  %v139_v10 = vsel %vm39_vm0, %v481_v6, 0.0 }
  0xb1   :  { %143 = vadd.xlane.f32.xlu0 %v142_v5  ;;  %140 = vadd.xlane.f32.xlu1 %v139_v10  ;;  %v78_v11 = vpop.xlane.xlu0 %77  ;;  %v81_v12 = vpop.xlane.xlu1 %80  ;;  %v145_v15 = vsel %vm39_vm0, %v483_v7, 0.0 }
  0xb2   :  { %321 = vpow2.f32 %v124_v8  ;;  %v100_v13 = vsub.f32 %v453_v24, %v78_v11  ;;  %v101_v14 = vsub.f32 %v455_v25, %v81_v12 }
  0xb3   :  { %v491_v16 = vpop.eup %309  ;;  %323 = vpow2.f32 %v126_v9 }
  0xb4   :  { %v493_v17 = vpop.eup %311  ;;  %v128_v18 = vmul.f32 1.442695, %v100_v13  ;;  %v130_v19 = vmul.f32 1.442695, %v101_v14  ;;  %v148_v20 = vsel %vm39_vm0, %v491_v16, 0.0 }
  0xb5   :  { %146 = vadd.xlane.f32.xlu1 %v145_v15  ;;  %149 = vadd.xlane.f32.xlu0 %v148_v20  ;;  %v84_v21 = vpop.xlane.xlu0 %83  ;;  %v87_v22 = vpop.xlane.xlu1 %86  ;;  %v151_v25 = vsel %vm39_vm0, %v493_v17, 0.0 }
  0xb6   :  { %325 = vpow2.f32 %v128_v18  ;;  %v102_v23 = vsub.f32 %v461_v28, %v84_v21  ;;  %v103_v24 = vsub.f32 %v463_v29, %v87_v22 }
  0xb7   :  { %v501_v26 = vpop.eup %313  ;;  %327 = vpow2.f32 %v130_v19 }
  0xb8   :  { %v503_v27 = vpop.eup %315  ;;  %v132_v30 = vmul.f32 1.442695, %v102_v23  ;;  %v134_v31 = vmul.f32 1.442695, %v103_v24  ;;  %v154_v32 = vsel %vm39_vm0, %v501_v26, 0.0 }
  0xb9   :  { %152 = vadd.xlane.f32.xlu1 %v151_v25  ;;  %155 = vadd.xlane.f32.xlu0 %v154_v32  ;;  %v157_v28 = vsel %vm39_vm0, %v503_v27, 0.0 }
  0xba   :  { %329 = vpow2.f32 %v132_v30 }
  0xbb   :  { %v509_v29 = vpop.eup %317  ;;  %331 = vpow2.f32 %v134_v31 }
  0xbc   :  { %v511_v33 = vpop.eup %319  ;;  %v160_v34 = vsel %vm39_vm0, %v509_v29, 0.0 }
  0xbd   :  { %158 = vadd.xlane.f32.xlu1 %v157_v28  ;;  %161 = vadd.xlane.f32.xlu0 %v160_v34  ;;  %v163_v35 = vsel %vm39_vm0, %v511_v33, 0.0 }
  0xbf   :  { %v517_v36 = vpop.eup %321 }
  0xc0   :  { %v519_v37 = vpop.eup %323  ;;  %v166_v38 = vsel %vm39_vm0, %v517_v36, 0.0 }
  0xc1   :  { %164 = vadd.xlane.f32.xlu1 %v163_v35  ;;  %167 = vadd.xlane.f32.xlu0 %v166_v38  ;;  %v169_v39 = vsel %vm39_vm0, %v519_v37, 0.0 }
  0xc3   :  { %v525_v40 = vpop.eup %325 }
  0xc4   :  { %v527_v41 = vpop.eup %327  ;;  %v172_v42 = vsel %vm39_vm0, %v525_v40, 0.0 }
  0xc5   :  { %170 = vadd.xlane.f32.xlu1 %v169_v39  ;;  %173 = vadd.xlane.f32.xlu0 %v172_v42  ;;  %v175_v43 = vsel %vm39_vm0, %v527_v41, 0.0 }
  0xc7   :  { %v533_v44 = vpop.eup %329 }
  0xc8   :  { %v535_v45 = vpop.eup %331  ;;  %v178_v46 = vsel %vm39_vm0, %v533_v44, 0.0 }
  0xc9   :  { %176 = vadd.xlane.f32.xlu1 %v175_v43  ;;  %179 = vadd.xlane.f32.xlu0 %v178_v46  ;;  %v181_v47 = vsel %vm39_vm0, %v535_v45, 0.0 }
  0xcd   :  { %182 = vadd.xlane.f32.xlu1 %v181_v47 }
 0x136   :  { %v138_v48 = vpop.xlane.xlu0 %137 }
 0x137   :  { %333 = vrcp.f32 %v138_v48 }
 0x13a   :  { %v141_v49 = vpop.xlane.xlu1 %140  ;;  %v144_v50 = vpop.xlane.xlu0 %143 }
 0x13b   :  { %335 = vrcp.f32 %v141_v49 }
 0x13c   :  { %337 = vrcp.f32 %v144_v50 }
 0x13e   :  { %v147_v51 = vpop.xlane.xlu1 %146  ;;  %v150_v52 = vpop.xlane.xlu0 %149 }
 0x13f   :  { %339 = vrcp.f32 %v147_v51 }
 0x140   :  { %341 = vrcp.f32 %v150_v52 }
 0x142   :  { %v153_v53 = vpop.xlane.xlu1 %152  ;;  %v156_v54 = vpop.xlane.xlu0 %155 }
 0x143   :  { %343 = vrcp.f32 %v153_v53 }
 0x144   :  { %v334_v55 = vpop.eup %333  ;;  %345 = vrcp.f32 %v156_v54 }
 0x145   :  { %v200_v56 = vmul.f32 %v334_v55, %v138_v48 }
 0x146   :  { %v159_v57 = vpop.xlane.xlu1 %158  ;;  %v162_v58 = vpop.xlane.xlu0 %161 }
 0x147   :  { %v216_v59 = vsub.f32 2.0, %v200_v56  ;;  %347 = vrcp.f32 %v159_v57 }
 0x148   :  { %v336_v62 = vpop.eup %335  ;;  %349 = vrcp.f32 %v162_v58 }
 0x149   :  { %v338_v63 = vpop.eup %337  ;;  %v232_v0 = vmul.f32 %v334_v55, %v216_v59  ;;  %v201_v1 = vmul.f32 %v336_v62, %v141_v49 }
 0x14a   :  { %v202_v2 = vmul.f32 %v338_v63, %v144_v50  ;;  %v165_v3 = vpop.xlane.xlu1 %164  ;;  %v168_v4 = vpop.xlane.xlu0 %167 }
 0x14b   :  { %v248_v5 = vmul.f32 %v471_v60, %v232_v0  ;;  %v217_v8 = vsub.f32 2.0, %v201_v1  ;;  %351 = vrcp.f32 %v165_v3 }
 0x14c   :  { %v340_v9 = vpop.eup %339  ;;  %v218_v10 = vsub.f32 2.0, %v202_v2  ;;  %353 = vrcp.f32 %v168_v4 }
 0x14d   :  { %v342_v11 = vpop.eup %341  ;;  %264 = vst.msk [vmem:[#allocation5] sm:$0xff] %vm39_vm0, %v248_v5  ;;  %v233_v12 = vmul.f32 %v336_v62, %v217_v8  ;;  %v203_v13 = vmul.f32 %v340_v9, %v147_v51 }
 0x14e   :  { %v234_v14 = vmul.f32 %v338_v63, %v218_v10  ;;  %v204_v15 = vmul.f32 %v342_v11, %v150_v52  ;;  %v171_v18 = vpop.xlane.xlu1 %170  ;;  %v174_v19 = vpop.xlane.xlu0 %173 }
 0x14f   :  { %v249_v20 = vmul.f32 %v481_v6, %v233_v12  ;;  %v219_v21 = vsub.f32 2.0, %v203_v13  ;;  %355 = vrcp.f32 %v171_v18 }
 0x150   :  { %v344_v22 = vpop.eup %343  ;;  %v250_v60 = vmul.f32 %v473_v61, %v234_v14  ;;  %v220_v23 = vsub.f32 2.0, %v204_v15  ;;  %357 = vrcp.f32 %v174_v19 }
 0x151   :  { %v346_v24 = vpop.eup %345  ;;  %265 = vst.msk [vmem:[#allocation5 + $0x8] sm:$0xff] %vm39_vm0, %v249_v20  ;;  %v235_v25 = vmul.f32 %v340_v9, %v219_v21  ;;  %v205_v30 = vmul.f32 %v344_v22, %v153_v53 }
 0x152   :  { %266 = vst.msk [vmem:[#allocation5 + $0x10] sm:$0xff] %vm39_vm0, %v250_v60  ;;  %v236_v31 = vmul.f32 %v342_v11, %v220_v23  ;;  %v206_v32 = vmul.f32 %v346_v24, %v156_v54  ;;  %v177_v28 = vpop.xlane.xlu1 %176  ;;  %v180_v34 = vpop.xlane.xlu0 %179 }
 0x153   :  { %v251_v6 = vmul.f32 %v483_v7, %v235_v25  ;;  %v221_v35 = vsub.f32 2.0, %v205_v30  ;;  %359 = vrcp.f32 %v177_v28 }
 0x154   :  { %v348_v38 = vpop.eup %347  ;;  %v252_v61 = vmul.f32 %v491_v16, %v236_v31  ;;  %v222_v39 = vsub.f32 2.0, %v206_v32  ;;  %361 = vrcp.f32 %v180_v34 }
 0x155   :  { %v350_v42 = vpop.eup %349  ;;  %267 = vst.msk [vmem:[#allocation5 + $0x18] sm:$0xff] %vm39_vm0, %v251_v6  ;;  %v237_v43 = vmul.f32 %v344_v22, %v221_v35  ;;  %v207_v46 = vmul.f32 %v348_v38, %v159_v57 }
 0x156   :  { %268 = vst.msk [vmem:[#allocation5 + $0x20] sm:$0xff] %vm39_vm0, %v252_v61  ;;  %v238_v47 = vmul.f32 %v346_v24, %v222_v39  ;;  %v208_v48 = vmul.f32 %v350_v42, %v162_v58  ;;  %v183_v49 = vpop.xlane.xlu1 %182 }
 0x157   :  { %v253_v50 = vmul.f32 %v493_v17, %v237_v43  ;;  %v223_v7 = vsub.f32 2.0, %v207_v46  ;;  %363 = vrcp.f32 %v183_v49 }
 0x158   :  { %v352_v51 = vpop.eup %351  ;;  %v254_v52 = vmul.f32 %v501_v26, %v238_v47  ;;  %v224_v16 = vsub.f32 2.0, %v208_v48 }
 0x159   :  { %v354_v53 = vpop.eup %353  ;;  %269 = vst.msk [vmem:[#allocation5 + $0x28] sm:$0xff] %vm39_vm0, %v253_v50  ;;  %v239_v54 = vmul.f32 %v348_v38, %v223_v7  ;;  %v209_v55 = vmul.f32 %v352_v51, %v165_v3 }
 0x15a   :  { %270 = vst.msk [vmem:[#allocation5 + $0x30] sm:$0xff] %vm39_vm0, %v254_v52  ;;  %v240_v56 = vmul.f32 %v350_v42, %v224_v16  ;;  %v210_v57 = vmul.f32 %v354_v53, %v168_v4 }
 0x15b   :  { %v255_v58 = vmul.f32 %v503_v27, %v239_v54  ;;  %v225_v59 = vsub.f32 2.0, %v209_v55 }
 0x15c   :  { %v356_v62 = vpop.eup %355  ;;  %v256_v17 = vmul.f32 %v509_v29, %v240_v56  ;;  %v226_v63 = vsub.f32 2.0, %v210_v57 }
 0x15d   :  { %v358_v0 = vpop.eup %357  ;;  %271 = vst.msk [vmem:[#allocation5 + $0x38] sm:$0xff] %vm39_vm0, %v255_v58  ;;  %v241_v26 = vmul.f32 %v352_v51, %v225_v59  ;;  %v211_v1 = vmul.f32 %v356_v62, %v171_v18 }
 0x15e   :  { %272 = vst.msk [vmem:[#allocation5 + $0x40] sm:$0xff] %vm39_vm0, %v256_v17  ;;  %v242_v2 = vmul.f32 %v354_v53, %v226_v63  ;;  %v212_v3 = vmul.f32 %v358_v0, %v174_v19 }
 0x15f   :  { %v257_v5 = vmul.f32 %v511_v33, %v241_v26  ;;  %v227_v8 = vsub.f32 2.0, %v211_v1 }
 0x160   :  { %v360_v4 = vpop.eup %359  ;;  %v258_v27 = vmul.f32 %v517_v36, %v242_v2  ;;  %v228_v9 = vsub.f32 2.0, %v212_v3 }
 0x161   :  { %v362_v10 = vpop.eup %361  ;;  %273 = vst.msk [vmem:[#allocation5 + $0x48] sm:$0xff] %vm39_vm0, %v257_v5  ;;  %v243_v29 = vmul.f32 %v356_v62, %v227_v8  ;;  %v213_v11 = vmul.f32 %v360_v4, %v177_v28 }
 0x162   :  { %274 = vst.msk [vmem:[#allocation5 + $0x50] sm:$0xff] %vm39_vm0, %v258_v27  ;;  %v244_v12 = vmul.f32 %v358_v0, %v228_v9  ;;  %v214_v13 = vmul.f32 %v362_v10, %v180_v34 }
 0x163   :  { %v259_v14 = vmul.f32 %v519_v37, %v243_v29  ;;  %v229_v15 = vsub.f32 2.0, %v213_v11 }
 0x164   :  { %v364_v18 = vpop.eup %363  ;;  %v260_v33 = vmul.f32 %v525_v40, %v244_v12  ;;  %v230_v19 = vsub.f32 2.0, %v214_v13 }
 0x165   :  { %275 = vst.msk [vmem:[#allocation5 + $0x58] sm:$0xff] %vm39_vm0, %v259_v14  ;;  %v245_v36 = vmul.f32 %v360_v4, %v229_v15  ;;  %v215_v20 = vmul.f32 %v364_v18, %v183_v49 }
 0x166   :  { %276 = vst.msk [vmem:[#allocation5 + $0x60] sm:$0xff] %vm39_vm0, %v260_v33  ;;  %v246_v21 = vmul.f32 %v362_v10, %v230_v19 }
 0x167   :  { %v261_v22 = vmul.f32 %v527_v41, %v245_v36  ;;  %v231_v60 = vsub.f32 2.0, %v215_v20 }
 0x168   :  { %v262_v23 = vmul.f32 %v533_v44, %v246_v21 }
 0x169   :  { %277 = vst.msk [vmem:[#allocation5 + $0x68] sm:$0xff] %vm39_vm0, %v261_v22  ;;  %v247_v37 = vmul.f32 %v364_v18, %v231_v60 }
 0x16a   :  { %278 = vst.msk [vmem:[#allocation5 + $0x70] sm:$0xff] %vm39_vm0, %v262_v23 }
 0x16b   :  { %v263_v40 = vmul.f32 %v535_v45, %v247_v37 }
 0x16d   :  { %279 = vst.msk [vmem:[#allocation5 + $0x78] sm:$0xff] %vm39_vm0, %v263_v40 }
 0x16e   :  { %396 = shalt.err (!%p393_p9)
}
 0x16f   :  { %291 = dma.vmem_to_hbm [thread:$0]  %s286_s13, 2048, %s580_s1, [#allocation4], %s410_s9, %s410_s9, %s411_s10  }
 0x170   :  { %407 = dma.done.wait [#allocation4], 2048  }
 0x171   :  { %408 = vsyncadd [#allocation4], 4294965248 }
 0x172   :  { %295 = vsyncpa [#allocation3], 1 }
 0x173   :  { %296 = vsyncpa [#allocation4], 1 }

</bundles_post_ra>
